<compile_context>
chip_gen: v6e
topology: v6e:2x2x1
jax: 0.10.0
libtpu: 0.0.40
codegen_flags: <defaults>
</compile_context>

<pallas_src>
import jax
import jax.numpy as jnp
import numpy as np
from jax import lax
from jax.experimental import pallas as pl
from jax.experimental.pallas import tpu as pltpu


def _gauss_mmse_kernel(z_ref, logsnr_ref, u_ref, sinv_ref, out_ref):
    z = z_ref[...]            # (tb, D) f32
    logsnr = logsnr_ref[...]  # (tb, 1) f32
    U = u_ref[...]            # (D, D)  f32
    S_inv = sinv_ref[...]     # (1, D)  f32

    # All snr-derived factors stay at shape (tb, 1); broadcast only happens at
    # the final (tb, D) multiplies.
    snr = jnp.exp(logsnr)            # (tb, 1)
    one_p_snr = 1.0 + snr            # (tb, 1)
    s1 = jnp.sqrt(one_p_snr)         # (tb, 1)  = sqrt(1 + snr)
    c = snr / s1                     # (tb, 1)  = sqrt(snr) * sqrt(snr / (1 + snr))

    # z @ U on the MXU.
    zu = jnp.dot(z, U, preferred_element_type=jnp.float32)            # (tb, D)

    # gain = (1 + snr) / (snr + 1/S); exact reciprocal (EUP) + VPU multiply.
    gain = one_p_snr * pl.reciprocal(snr + S_inv)                      # (tb, D)
    g = gain * zu                                                      # (tb, D)

    # g @ U.T without an in-kernel transpose: contract dim 1 of both operands.
    xhat = lax.dot_general(
        g, U,
        dimension_numbers=(((1,), (1,)), ((), ())),
        preferred_element_type=jnp.float32)                            # (tb, D)

    # eps_hat = sqrt(1+snr) * z - sqrt(snr) * sqrt(snr/(1+snr)) * xhat
    out_ref[...] = s1 * z - c * xhat


def _round_up(x, m):
    return ((x + m - 1) // m) * m


def gauss_true_mmse_forward(z, logsnr, U, S, dummy=None):
    """eps_hat(z, logsnr) for the Gaussian-optimal denoiser (Pallas TPU)."""
    B, d = z.shape
    z = z.astype(jnp.float32)
    logsnr2d = logsnr.reshape(B, 1).astype(jnp.float32)
    U = U.astype(jnp.float32)
    S_inv = (1.0 / S.astype(jnp.float32)).reshape(1, d)

    # ---- pad to hardware-friendly shapes -----------------------------------
    # Feature dim -> multiple of 128 (lane-dense operands, unmasked vst).
    # U is padded block-diagonally with identity and 1/S with ones; padded z
    # columns are zero, so padded outputs are exactly zero and the real
    # columns are mathematically unchanged.
    D = _round_up(d, 128)
    if D != d:
        U_p = jnp.zeros((D, D), jnp.float32).at[:d, :d].set(U)
        idx = jnp.arange(d, D)
        U_p = U_p.at[idx, idx].set(1.0)
        S_inv_p = jnp.concatenate(
            [S_inv, jnp.ones((1, D - d), jnp.float32)], axis=1)
        z_p = jnp.pad(z, ((0, 0), (0, D - d)))
    else:
        U_p, S_inv_p, z_p = U, S_inv, z

    # Batch -> multiple of the batch tile (itself a multiple of 8 sublanes).
    # Padded rows use logsnr = 0 (snr = 1): no inf/NaN, sliced away afterwards.
    tb = 256 if B >= 256 else _round_up(B, 8)
    Bp = _round_up(B, tb)
    if Bp != B:
        z_p = jnp.pad(z_p, ((0, Bp - B), (0, 0)))
        logsnr2d = jnp.pad(logsnr2d, ((0, Bp - B), (0, 0)))

    out_p = pl.pallas_call(
        _gauss_mmse_kernel,
        out_shape=jax.ShapeDtypeStruct((Bp, D), jnp.float32),
        grid_spec=pltpu.PrefetchScalarGridSpec(
            num_scalar_prefetch=0,
            grid=(Bp // tb,),
            in_specs=[
                pl.BlockSpec((tb, D), lambda i: (i, 0)),   # z tile
                pl.BlockSpec((tb, 1), lambda i: (i, 0)),   # logsnr column
                pl.BlockSpec((D, D), lambda i: (0, 0)),    # U (resident)
                pl.BlockSpec((1, D), lambda i: (0, 0)),    # 1/S (resident)
            ],
            out_specs=pl.BlockSpec((tb, D), lambda i: (i, 0)),
        ),
        compiler_params=pltpu.CompilerParams(
            dimension_semantics=("parallel",),  # B tiles shard across TCs on v7x
        ),
    )(z_p, logsnr2d, U_p, S_inv_p)

    out = out_p[:B, :d]
    if dummy is not None:
        # Parity with the PyTorch module's `+ 0.0 * dummy.sum()`
        # (kept out of the kernel; preserves parameter connectivity at ~zero cost).
        out = out + 0.0 * jnp.sum(dummy.astype(jnp.float32))
    return out


def reference_forward(z, logsnr, U, S, dummy):
    """Pure-JAX reference mirroring the PyTorch forward exactly."""
    snr = jnp.exp(logsnr).reshape(-1, 1)
    xhat = z @ U
    xhat = (1.0 + snr) / (snr + 1.0 / S) * xhat
    xhat = xhat @ U.T
    xhat = jnp.sqrt(snr / (1.0 + snr)) * xhat
    return jnp.sqrt(1.0 + snr) * z - jnp.sqrt(snr) * xhat + 0.0 * jnp.sum(dummy)


if __name__ == "__main__":
    key = jax.random.PRNGKey(0)
    k_cov, k_z1, k_ls1, k_cov2, k_z2, k_dummy = jax.random.split(key, 6)

    # ---- deterministic parameter construction (mirrors __init__) ----
    d, B = 32, 8
    A = jax.random.normal(k_cov, (d, d), dtype=jnp.float32)
    cov = (A @ A.T) / d + 0.5 * jnp.eye(d, dtype=jnp.float32)
    S, U = jnp.linalg.eigh(cov)          # glue, as in the module's __init__
    S = S.astype(jnp.float32)
    U = U.astype(jnp.float32)
    dummy = jax.random.normal(k_dummy, (2,), dtype=jnp.float32)

    # ---- inputs ----
    z = jax.random.normal(k_z1, (B, d), dtype=jnp.float32)
    logsnr = jax.random.normal(k_ls1, (B,), dtype=jnp.float32)

    # ---- run kernel + check ----
    out = jax.block_until_ready(gauss_true_mmse_forward(z, logsnr, U, S, dummy))
    ref = jax.block_until_ready(reference_forward(z, logsnr, U, S, dummy))
    np.testing.assert_allclose(np.asarray(out), np.asarray(ref),
                               rtol=1e-5, atol=1e-5)

    # ---- second check with non-aligned (B, d) to exercise pad/slice path ----
    B2, d2 = 5, 48
    A2 = jax.random.normal(k_cov2, (d2, d2), dtype=jnp.float32)
    cov2 = (A2 @ A2.T) / d2 + 0.5 * jnp.eye(d2, dtype=jnp.float32)
    S2, U2 = jnp.linalg.eigh(cov2)
    S2 = S2.astype(jnp.float32)
    U2 = U2.astype(jnp.float32)
    z2 = jax.random.normal(k_z2, (B2, d2), dtype=jnp.float32)
    logsnr2 = jnp.linspace(-2.0, 2.0, B2, dtype=jnp.float32)

    out2 = jax.block_until_ready(gauss_true_mmse_forward(z2, logsnr2, U2, S2, dummy))
    ref2 = jax.block_until_ready(reference_forward(z2, logsnr2, U2, S2, dummy))
    np.testing.assert_allclose(np.asarray(out2), np.asarray(ref2),
                               rtol=1e-5, atol=1e-5)

    print("KERNEL_OK")
</pallas_src>

<mosaic_0001>
module attributes {stable_mosaic.version = 11 : i64} {
  func.func @_gauss_mmse_kernel(%arg0: i32, %arg1: memref<8x128xf32, #tpu.memory_space<vmem>>, %arg2: memref<8x1xf32, #tpu.memory_space<vmem>>, %arg3: memref<128x128xf32, #tpu.memory_space<vmem>>, %arg4: memref<1x128xf32, #tpu.memory_space<vmem>>, %arg5: memref<8x128xf32, #tpu.memory_space<vmem>>) attributes {dimension_semantics = [#tpu.dimension_semantics<parallel>], iteration_bounds = array<i64: 1>, scalar_prefetch = 0 : i64, scratch_operands = 0 : i64, tpu.core_type = #tpu.core_type<tc>, window_params = [{transform_indices = @transform_0, window_bounds = array<i64: 8, 128>}, {transform_indices = @transform_1, window_bounds = array<i64: 8, 1>}, {pipeline_mode = #tpu.pipeline_mode<synchronous>, transform_indices = @transform_2, window_bounds = array<i64: 128, 128>}, {pipeline_mode = #tpu.pipeline_mode<synchronous>, transform_indices = @transform_3, window_bounds = array<i64: 1, 128>}, {transform_indices = @transform_4, window_bounds = array<i64: 8, 128>}]} {
    %c0 = arith.constant 0 : index
    %c0_0 = arith.constant 0 : index
    %0 = vector.load %arg1[%c0, %c0_0] : memref<8x128xf32, #tpu.memory_space<vmem>>, vector<8x128xf32>
    %c0_1 = arith.constant 0 : index
    %c0_2 = arith.constant 0 : index
    %1 = vector.load %arg2[%c0_1, %c0_2] : memref<8x1xf32, #tpu.memory_space<vmem>>, vector<8x1xf32>
    %c0_3 = arith.constant 0 : index
    %c0_4 = arith.constant 0 : index
    %2 = vector.load %arg3[%c0_3, %c0_4] : memref<128x128xf32, #tpu.memory_space<vmem>>, vector<128x128xf32>
    %c0_5 = arith.constant 0 : index
    %c0_6 = arith.constant 0 : index
    %3 = vector.load %arg4[%c0_5, %c0_6] : memref<1x128xf32, #tpu.memory_space<vmem>>, vector<1x128xf32>
    %4 = math.exp %1 : vector<8x1xf32>
    %cst = arith.constant 1.000000e+00 : f32
    %5 = vector.broadcast %cst : f32 to vector<8x1xf32>
    %6 = arith.addf %5, %4 : vector<8x1xf32>
    %7 = math.sqrt %6 : vector<8x1xf32>
    %8 = arith.divf %4, %7 : vector<8x1xf32>
    %cst_7 = arith.constant dense<0.000000e+00> : vector<8x128xf32>
    %9 = tpu.matmul %0, %2, %cst_7 {dimension_numbers = #tpu.dot_dimension_numbers<[1], [0], [0], [1], [0, 0, 1, 1], [], []>} : vector<8x128xf32>, vector<128x128xf32>, vector<8x128xf32> -> vector<8x128xf32>
    %10 = vector.broadcast %4 : vector<8x1xf32> to vector<8x128xf32>
    %11 = vector.broadcast %3 : vector<1x128xf32> to vector<8x128xf32>
    %12 = arith.addf %10, %11 : vector<8x128xf32>
    %13 = tpu.reciprocal %12 : vector<8x128xf32> -> vector<8x128xf32>
    %14 = vector.broadcast %6 : vector<8x1xf32> to vector<8x128xf32>
    %15 = arith.mulf %14, %13 : vector<8x128xf32>
    %16 = arith.mulf %15, %9 : vector<8x128xf32>
    %cst_8 = arith.constant dense<0.000000e+00> : vector<8x128xf32>
    %17 = tpu.matmul %16, %2, %cst_8 {dimension_numbers = #tpu.dot_dimension_numbers<[1], [1], [0], [0], [0, 0, 1, 0], [], []>} : vector<8x128xf32>, vector<128x128xf32>, vector<8x128xf32> -> vector<8x128xf32>
    %18 = vector.broadcast %7 : vector<8x1xf32> to vector<8x128xf32>
    %19 = arith.mulf %18, %0 : vector<8x128xf32>
    %20 = vector.broadcast %8 : vector<8x1xf32> to vector<8x128xf32>
    %21 = arith.mulf %20, %17 : vector<8x128xf32>
    %22 = arith.subf %19, %21 : vector<8x128xf32>
    %c0_9 = arith.constant 0 : index
    %c0_10 = arith.constant 0 : index
    %23 = vector.load %arg5[%c0_9, %c0_10] : memref<8x128xf32, #tpu.memory_space<vmem>>, vector<8x128xf32>
    tpu.vector_store %arg5[%c0_9, %c0_10], %22 {strides = array<i32>} : memref<8x128xf32, #tpu.memory_space<vmem>>, vector<8x128xf32>,
    return
  }
  func.func @transform_0(%arg0: i32) -> (i32, i32) {
    %c0_i32 = arith.constant 0 : i32
    %c0_i32_0 = arith.constant 0 : i32
    return %arg0, %c0_i32 : i32, i32
  }
  func.func @transform_1(%arg0: i32) -> (i32, i32) {
    %c0_i32 = arith.constant 0 : i32
    %c0_i32_0 = arith.constant 0 : i32
    return %arg0, %c0_i32 : i32, i32
  }
  func.func @transform_2(%arg0: i32) -> (i32, i32) {
    %c0_i32 = arith.constant 0 : i32
    %c0_i32_0 = arith.constant 0 : i32
    %c0_i32_1 = arith.constant 0 : i32
    return %c0_i32, %c0_i32_0 : i32, i32
  }
  func.func @transform_3(%arg0: i32) -> (i32, i32) {
    %c0_i32 = arith.constant 0 : i32
    %c0_i32_0 = arith.constant 0 : i32
    %c0_i32_1 = arith.constant 0 : i32
    return %c0_i32, %c0_i32_0 : i32, i32
  }
  func.func @transform_4(%arg0: i32) -> (i32, i32) {
    %c0_i32 = arith.constant 0 : i32
    %c0_i32_0 = arith.constant 0 : i32
    return %arg0, %c0_i32 : i32, i32
  }
}

</mosaic_0001>

<bundles_post_ra>
// kernel: tpu_custom_call.1
= control target key start
LH: loop header
LB: loop body
LE: loop exit
PB: predicated region body
PF: predicated region fallthrough
CT: control target
= control target key end

     0   :  { %9 = vsyncpa [#allocation3], 0  ;;  %s499_s0 = inlined_call_operand.vmem [shape: f32[8,128], index: 0, kind: input, shape index: {}]   ;;  %s500_s1 = inlined_call_operand.vmem [shape: f32[8,1], index: 1, kind: input, shape index: {}]   ;;  %s501_s2 = inlined_call_operand.hbm [shape: f32[128,128], index: 2, kind: input, shape index: {}]   ;;  %s502_s3 = inlined_call_operand.vmem [shape: f32[1,128], index: 3, kind: input, shape index: {}]   ;;  %s503_s4 = inlined_call_operand.hbm [shape: f32[8,128], index: 4, kind: output, shape index: {}]  }
   0x1   :  { %10 = vsyncpa [#allocation4], 0  ;;  %s418_s15 = smov [#allocation2]  }
   0x2   :  { %s20_s16 = sshll.u32 %s418_s15, 4  ;;  %s21_s16 = int_to_ptr.vmem [resolvable:$true] %s20_s16 }
   0x3   :  { %s382_s17 = scalar_lea.vmem %s21_s16, 2048  ;;  %p387_p1 = scmp.lt.s32.totalorder %s21_s16, %s21_s16 }
   0x4   :  { %p383_p0 = scmp.ne.s32.totalorder %s21_s16, %s382_s17  ;;  %p388_p2 = scmp.lt.s32.totalorder %s382_s17, %s382_s17 }
   0x6   :  { %p389_p3 = por %p388_p2, %p387_p1 }
   0x8   :  { %p390_p4 = pnand %p389_p3, %p383_p0 }
   0xa   :  { %393 = shalt.err (!%p390_p4)
}
   0xb   :  { %s419_s18 = smov 128   ;;  %s420_s19 = smov 8  }
   0xc   :  { %26 = dma.hbm_to_vmem [thread:$0]  %s501_s2, 2048, %s21_s16, [#allocation3], %s419_s18, %s419_s18, %s420_s19  }
   0xd   :  { %414 = dma.done.wait [#allocation3], 2048  }
   0xe   :  { %415 = vsyncadd [#allocation3], 4294965248  ;;  %v421_v0 = vmov 0.0   ;;  %vm422_vm0 = vmmov 0   ;;  %v423_v1 = vmov 0   ;;  %v49_v2 = vld [vmem:[#allocation2 + $0x78] sm:$0xff] }
   0xf   :  { %287 = vmatprep.subr.mxu0 %v421_v0  ;;  %319 = vmatprep.mubr.msk.f32.mxu0 %vm422_vm0, %v421_v0  ;;  %v48_v3 = vld [vmem:[#allocation2 + $0x70] sm:$0xff]  ;;  %v47_v4 = vld [vmem:[#allocation2 + $0x68] sm:$0xff]  ;;  %v46_v5 = vld [vmem:[#allocation2 + $0x60] sm:$0xff]  ;;  %s424_s25 = smov [#allocation5]  }
  0x10   :  { %364 = vset.pattern.permute.xlu0 %v423_v1  ;;  %322 = vmatprep.subr.mxu1 %v421_v0  ;;  %v33_v6 = vld [vmem:[%s500_s1] sm:$0xff]  ;;  %v45_v7 = vld [vmem:[#allocation2 + $0x58] sm:$0xff]  ;;  %v44_v9 = vld [vmem:[#allocation2 + $0x50] sm:$0xff]  ;;  %s243_s26 = sshll.u32 %s424_s25, 4  ;;  %s244_s26 = int_to_ptr.vmem [resolvable:$true] %s243_s26 }
  0x11   :  { %354 = vmatprep.mubr.msk.f32.mxu1 %vm422_vm0, %v421_v0  ;;  %365 = vset.pattern.permute.xlu1 %v423_v1  ;;  %v51_v8 = vmul.f32 1.442695, %v33_v6  ;;  %v43_v10 = vld [vmem:[#allocation2 + $0x48] sm:$0xff]  ;;  %v42_v11 = vld [vmem:[#allocation2 + $0x40] sm:$0xff]  ;;  %v41_v12 = vld [vmem:[#allocation2 + $0x38] sm:$0xff]  ;;  %p399_p6 = scmp.lt.s32.totalorder %s244_s26, %s244_s26 }
  0x12   :  { %288 = vmatpush3.msra.mxu0 %v49_v2  ;;  %323 = vmatpush3.xpose.msra.mxu1 %v49_v2  ;;  %v40_v13 = vld [vmem:[#allocation2 + $0x30] sm:$0xff]  ;;  %v39_v14 = vld [vmem:[#allocation2 + $0x28] sm:$0xff]  ;;  %v38_v15 = vld [vmem:[#allocation2 + $0x20] sm:$0xff] }
  0x13   :  { %289 = vmatprep.subr.mxu0 %v421_v0  ;;  %324 = vmatprep.subr.mxu1 %v421_v0  ;;  %366 = vpow2.f32 %v51_v8  ;;  %v37_v17 = vld [vmem:[#allocation2 + $0x18] sm:$0xff]  ;;  %v36_v19 = vld [vmem:[#allocation2 + $0x10] sm:$0xff]  ;;  %v35_v20 = vld [vmem:[#allocation2 + $0x8] sm:$0xff] }
  0x14   :  { %290 = vmatpush3.msra.mxu0 %v48_v3  ;;  %v34_v21 = vld [vmem:[#allocation2] sm:$0xff] }
  0x15   :  { %291 = vmatprep.subr.mxu0 %v421_v0  ;;  %v32_v22 = vld [vmem:[%s499_s0] sm:$0xff] }
  0x16   :  { %292 = vmatpush3.msra.mxu0 %v47_v4  ;;  %325 = vmatpush3.xpose.msra.mxu1 %v48_v3  ;;  %v252_v30 = vld [vmem:[%s502_s3] ss:$0 sm:$0xff]  ;;  %s394_s3 = scalar_lea.vmem %s244_s26, 128 }
  0x17   :  { %293 = vmatprep.subr.mxu0 %v421_v0  ;;  %326 = vmatprep.subr.mxu1 %v421_v0  ;;  %p395_p5 = scmp.ne.s32.totalorder %s244_s26, %s394_s3  ;;  %p400_p7 = scmp.lt.s32.totalorder %s394_s3, %s394_s3 }
  0x18   :  { %294 = vmatpush3.msra.mxu0 %v46_v5 }
  0x19   :  { %295 = vmatprep.subr.mxu0 %v421_v0  ;;  %p401_p8 = por %p400_p7, %p399_p6 }
  0x1a   :  { %296 = vmatpush3.msra.mxu0 %v45_v7  ;;  %327 = vmatpush3.xpose.msra.mxu1 %v47_v4 }
  0x1b   :  { %297 = vmatprep.subr.mxu0 %v421_v0  ;;  %328 = vmatprep.subr.mxu1 %v421_v0  ;;  %p402_p9 = pnand %p401_p8, %p395_p5 }
  0x1c   :  { %298 = vmatpush3.msra.mxu0 %v44_v9 }
  0x1d   :  { %299 = vmatprep.subr.mxu0 %v421_v0 }
  0x1e   :  { %300 = vmatpush3.msra.mxu0 %v43_v10  ;;  %329 = vmatpush3.xpose.msra.mxu1 %v46_v5 }
  0x1f   :  { %301 = vmatprep.subr.mxu0 %v421_v0  ;;  %330 = vmatprep.subr.mxu1 %v421_v0 }
  0x20   :  { %302 = vmatpush3.msra.mxu0 %v42_v11  ;;  %v367_v16 = vpop.eup %366 }
  0x21   :  { %303 = vmatprep.subr.mxu0 %v421_v0  ;;  %135 = vperm.xlu0 %364, %v367_v16   ;;  %v53_v18 = vadd.f32 1.0, %v367_v16 }
  0x22   :  { %304 = vmatpush3.msra.mxu0 %v41_v12  ;;  %331 = vmatpush3.xpose.msra.mxu1 %v45_v7 }
  0x23   :  { %305 = vmatprep.subr.mxu0 %v421_v0  ;;  %332 = vmatprep.subr.mxu1 %v421_v0  ;;  %368 = vrsqrt.f32 %v53_v18  ;;  %vm56_vm1 = vcmp.eq.f32.partialorder %v53_v18, inf  ;;  %v59_v24 = vand.u32 2147483648, %v53_v18  ;;  %vm58_vm2 = vcmp.eq.f32.partialorder %v53_v18, 0.0 }
  0x24   :  { %306 = vmatpush3.msra.mxu0 %v40_v13 }
  0x25   :  { %307 = vmatprep.subr.mxu0 %v421_v0  ;;  %148 = vperm.xlu0 %364, %v53_v18  }
  0x26   :  { %308 = vmatpush3.msra.mxu0 %v39_v14  ;;  %333 = vmatpush3.xpose.msra.mxu1 %v44_v9 }
  0x27   :  { %309 = vmatprep.subr.mxu0 %v421_v0  ;;  %334 = vmatprep.subr.mxu1 %v421_v0 }
  0x28   :  { %310 = vmatpush3.msra.mxu0 %v38_v15 }
  0x29   :  { %311 = vmatprep.subr.mxu0 %v421_v0 }
  0x2a   :  { %312 = vmatpush3.msra.mxu0 %v37_v17  ;;  %335 = vmatpush3.xpose.msra.mxu1 %v43_v10 }
  0x2b   :  { %313 = vmatprep.subr.mxu0 %v421_v0  ;;  %336 = vmatprep.subr.mxu1 %v421_v0 }
  0x2c   :  { %314 = vmatpush3.msra.mxu0 %v36_v19 }
  0x2d   :  { %315 = vmatprep.subr.mxu0 %v421_v0 }
  0x2e   :  { %316 = vmatpush3.msra.mxu0 %v35_v20  ;;  %337 = vmatpush3.xpose.msra.mxu1 %v42_v11 }
  0x2f   :  { %317 = vmatprep.subr.mxu0 %v421_v0  ;;  %338 = vmatprep.subr.mxu1 %v421_v0 }
  0x30   :  { %318 = vmatpush3.msra.mxu0 %v34_v21  ;;  %v369_v23 = vpop.eup %368 }
  0x31   :  { %320 = vmatmul.mubr.f32.vlgmr.msra.gmra.mxu0 %v32_v22  ;;  %v55_v25 = vmul.f32 %v369_v23, %v53_v18 }
  0x32   :  { %339 = vmatpush3.xpose.msra.mxu1 %v41_v12 }
  0x33   :  { %340 = vmatprep.subr.mxu1 %v421_v0  ;;  %v57_v26 = vsel %vm56_vm1, %v53_v18, %v55_v25 }
  0x34   :  { %v60_v27 = vsel %vm58_vm2, %v59_v24, %v57_v26 }
  0x35   :  { %225 = vperm.xlu1 %365, %v60_v27   ;;  %370 = vrcp.f32 %v60_v27 }
  0x36   :  { %341 = vmatpush3.xpose.msra.mxu1 %v40_v13 }
  0x37   :  { %342 = vmatprep.subr.mxu1 %v421_v0 }
  0x3a   :  { %343 = vmatpush3.xpose.msra.mxu1 %v39_v14 }
  0x3b   :  { %344 = vmatprep.subr.mxu1 %v421_v0 }
  0x3e   :  { %345 = vmatpush3.xpose.msra.mxu1 %v38_v15 }
  0x3f   :  { %346 = vmatprep.subr.mxu1 %v421_v0 }
  0x42   :  { %347 = vmatpush3.xpose.msra.mxu1 %v37_v17  ;;  %v371_v28 = vpop.eup %370 }
  0x43   :  { %348 = vmatprep.subr.mxu1 %v421_v0  ;;  %v62_v29 = vmul.f32 %v371_v28, %v367_v16 }
  0x45   :  { %231 = vperm.xlu1 %365, %v62_v29  }
  0x46   :  { %349 = vmatpush3.xpose.msra.mxu1 %v36_v19 }
  0x47   :  { %350 = vmatprep.subr.mxu1 %v421_v0 }
  0x4a   :  { %351 = vmatpush3.xpose.msra.mxu1 %v35_v20 }
  0x4b   :  { %352 = vmatprep.subr.mxu1 %v421_v0 }
  0x4e   :  { %353 = vmatpush3.xpose.msra.mxu1 %v34_v21 }
  0x9c   :  { %v136_v31 = vpop.permute.xlu0 %135 }
  0x9d   :  { %v144_v32 = vadd.f32 %v252_v30, %v136_v31 }
  0x9f   :  { %372 = vrcp.f32 %v144_v32 }
  0xa0   :  { %v149_v34 = vpop.permute.xlu0 %148 }
  0xac   :  { %v373_v33 = vpop.eup %372 }
  0xad   :  { %v151_v35 = vmul.f32 %v373_v33, %v149_v34 }
  0xb0   :  { %v226_v39 = vpop.permute.xlu1 %225 }
  0xb1   :  { %v228_v42 = vmul.f32 %v226_v39, %v32_v22 }
  0xc0   :  { %v232_v40 = vpop.permute.xlu1 %231 }
  0xf1   :  { %v129_v36 = vpop.f32.mrf.mxu0 }
  0xf2   :  { %v152_v37 = vmul.f32 %v151_v35, %v129_v36 }
  0xf3   :  { %v321_v38 = vpop.f32.mrf.mxu0 }
  0xf4   :  { %355 = vmatmul.mubr.f32.vlgmr.msra.gmra.mxu1 %v152_v37 }
 0x1b4   :  { %v219_v41 = vpop.f32.mrf.mxu1 }
 0x1b5   :  { %v234_v43 = vmul.f32 %v232_v40, %v219_v41 }
 0x1b6   :  { %v356_v44 = vpop.f32.mrf.mxu1 }
 0x1b7   :  { %v235_v45 = vsub.f32 %v228_v42, %v234_v43 }
 0x1b9   :  { %236 = vst [vmem:[#allocation5] sm:$0xff] %v235_v45 }
 0x1ba   :  { %405 = shalt.err (!%p402_p9)
}
 0x1bb   :  { %246 = dma.vmem_to_hbm [thread:$0]  %s244_s26, 128, %s503_s4, [#allocation4]  }
 0x1bc   :  { %416 = dma.done.wait [#allocation4], 128  }
 0x1bd   :  { %417 = vsyncadd [#allocation4], 4294967168 }
 0x1be   :  { %250 = vsyncpa [#allocation3], 1 }
 0x1bf   :  { %251 = vsyncpa [#allocation4], 1 }

</bundles_post_ra>
